<compile_context>
chip_gen: v6e
topology: v6e:2x2x1
jax: 0.10.0
libtpu: 0.0.40
codegen_flags: <defaults>
</compile_context>

<pallas_src>
import math
import functools

import jax
import jax.numpy as jnp
from jax import lax
from jax.experimental import pallas as pl
from jax.experimental.pallas import tpu as pltpu

NEG_INF = -1e30  # large finite negative (avoids inf-inf NaNs in online softmax)


def _pick_tile(n, target, lane=False):
    """Largest t <= target with n % t == 0 and t aligned (8 sublane / 128 lane),
    falling back to the full dimension (always a legal block size)."""
    align = 128 if lane else 8
    t = min(n, target)
    while t >= 1:
        if n % t == 0 and (t == n or t % align == 0):
            return t
        t -= 1
    return n


# --------------------------------------------------------------------------
# Kernel 1: QKV projection + RoPE, head-major bf16 outputs.
# grid = (B, S // TS, num_heads)
# --------------------------------------------------------------------------
def qkv_rope_kernel(x_ref, wq_ref, wk_ref, wv_ref, cos_ref, sin_ref,
                    q_out, k_out, v_out, *, num_kv_heads, head_dim, scale):
    h = pl.program_id(2)
    half = head_dim // 2

    x = x_ref[0]                       # (TS, 2H) bf16
    c = cos_ref[0]                     # (TS, half) f32
    s = sin_ref[0]                     # (TS, half) f32

    # Q projection for this head (bf16 MXU, f32 accumulation) + RoPE, with the
    # 1/sqrt(head_dim) softmax scale folded into the rotation tables.
    q = jnp.dot(x, wq_ref[0], preferred_element_type=jnp.float32)   # (TS, hd)
    q1 = q[:, :half]
    q2 = q[:, half:]
    cq = c * scale
    sq = s * scale
    q_out[0, 0, :, :half] = (q1 * cq - q2 * sq).astype(q_out.dtype)
    q_out[0, 0, :, half:] = (q2 * cq + q1 * sq).astype(q_out.dtype)

    # K/V projection + RoPE once per KV head only (not once per Q head).
    @pl.when(h < num_kv_heads)
    def _():
        k = jnp.dot(x, wk_ref[0], preferred_element_type=jnp.float32)
        v = jnp.dot(x, wv_ref[0], preferred_element_type=jnp.float32)
        k1 = k[:, :half]
        k2 = k[:, half:]
        k_out[0, 0, :, :half] = (k1 * c - k2 * s).astype(k_out.dtype)
        k_out[0, 0, :, half:] = (k2 * c + k1 * s).astype(k_out.dtype)
        v_out[0, 0] = v.astype(v_out.dtype)


# --------------------------------------------------------------------------
# Kernel 2: flash attention (online softmax) + fused output projection.
# grid = (B, S // TQ, num_kv_heads, S // TK)
# --------------------------------------------------------------------------
def flash_attn_oproj_kernel(*refs, groups, head_dim, tq, tk, mask_mode):
    if mask_mode == "full":
        (q_ref, k_ref, v_ref, wo_ref, mask_ref, o_ref,
         m_sc, l_sc, acc_sc, out_sc) = refs
    else:
        (q_ref, k_ref, v_ref, wo_ref, o_ref,
         m_sc, l_sc, acc_sc, out_sc) = refs
        mask_ref = None

    qi = pl.program_id(1)
    kvh = pl.program_id(2)
    ki = pl.program_id(3)
    nkv = pl.num_programs(2)
    nk = pl.num_programs(3)

    @pl.when(ki == 0)
    def _():
        m_sc[...] = jnp.full_like(m_sc, NEG_INF)
        l_sc[...] = jnp.zeros_like(l_sc)
        acc_sc[...] = jnp.zeros_like(acc_sc)

    @pl.when(jnp.logical_and(kvh == 0, ki == 0))
    def _():
        out_sc[...] = jnp.zeros_like(out_sc)

    def compute():
        # GQA batching: the `groups` Q heads sharing this KV head are stacked
        # into a single (groups*TQ, hd) operand for the MXU.
        q = q_ref[0].reshape(groups * tq, head_dim)        # bf16, pre-scaled + RoPE'd
        k = k_ref[0, 0]                                    # (TK, hd) bf16
        v = v_ref[0, 0]                                    # (TK, hd) bf16

        s = jnp.dot(q, k.T, preferred_element_type=jnp.float32)   # (g*TQ, TK) f32
        s = s.reshape(groups, tq, tk)

        if mask_mode == "causal":
            # In-kernel causal mask: no (B,S,S) mask DMA at all.
            q_pos = qi * tq + lax.broadcasted_iota(jnp.int32, (1, tq, tk), 1)
            k_pos = ki * tk + lax.broadcasted_iota(jnp.int32, (1, tq, tk), 2)
            s = jnp.where(q_pos >= k_pos, s, NEG_INF)
        elif mask_mode == "full":
            s = s + mask_ref[0][None, :, :]                # additive, matches torch

        m_prev = m_sc[...]                                 # (g, TQ, 1)
        m_new = jnp.maximum(m_prev, jnp.max(s, axis=-1, keepdims=True))
        alpha = jnp.exp(m_prev - m_new)
        p = jnp.exp(s - m_new)                             # (g, TQ, TK) f32
        l_sc[...] = alpha * l_sc[...] + jnp.sum(p, axis=-1, keepdims=True)
        pv = jnp.dot(p.reshape(groups * tq, tk).astype(jnp.bfloat16), v,
                     preferred_element_type=jnp.float32)
        acc_sc[...] = alpha * acc_sc[...] + pv.reshape(groups, tq, head_dim)
        m_sc[...] = m_new

    if mask_mode == "causal":
        # Skip key tiles that lie entirely above the diagonal.
        @pl.when(ki * tk <= qi * tq + (tq - 1))
        def _():
            compute()
    else:
        compute()

    # After the last key tile of this KV head: normalize and accumulate this
    # head group's contribution to the output projection (fused o_proj).
    @pl.when(ki == nk - 1)
    def _():
        inv_l = pl.reciprocal(l_sc[...], approx=True)      # EUP, off the VALU path
        attn = acc_sc[...] * inv_l                         # (g, TQ, hd) f32
        acc_o = out_sc[...]
        for j in range(groups):                            # static, small
            acc_o = acc_o + jnp.dot(attn[j].astype(jnp.bfloat16), wo_ref[j],
                                    preferred_element_type=jnp.float32)
        out_sc[...] = acc_o

    @pl.when(jnp.logical_and(kvh == nkv - 1, ki == nk - 1))
    def _():
        o_ref[0] = out_sc[...].astype(o_ref.dtype)


# --------------------------------------------------------------------------
# Wrapper
# --------------------------------------------------------------------------
def llama_eagle3_attention(hidden_states, wq, wk, wv, wo, *,
                           num_heads, num_kv_heads, max_position_embeddings,
                           attention_mask=None, position_ids=None, lck=0,
                           causal=False, rope_base=10000.0,
                           q_tile=256, k_tile=512, s_tile=256):
    B, S, twoH = hidden_states.shape
    H = twoH // 2
    assert H % num_heads == 0, "hidden_size must be divisible by num_heads"
    head_dim = H // num_heads
    assert head_dim % 2 == 0, "head_dim must be even for RoPE"
    assert num_heads % num_kv_heads == 0
    groups = num_heads // num_kv_heads
    half = head_dim // 2
    out_dtype = hidden_states.dtype

    # ---- host-side prep (cheap XLA ops; weights would be pre-reshaped once
    #      in a real deployment) -------------------------------------------
    x = hidden_states.astype(jnp.bfloat16)
    wq_hm = wq.reshape(twoH, num_heads, head_dim).transpose(1, 0, 2).astype(jnp.bfloat16)
    wk_hm = wk.reshape(twoH, num_kv_heads, head_dim).transpose(1, 0, 2).astype(jnp.bfloat16)
    wv_hm = wv.reshape(twoH, num_kv_heads, head_dim).transpose(1, 0, 2).astype(jnp.bfloat16)
    wo_hm = wo.reshape(num_heads, head_dim, H).astype(jnp.bfloat16)

    # RoPE tables (only the first half; the second half of cos/sin is identical
    # because emb = cat(freqs, freqs)).  Matches the module's safe_position_ids.
    total_seq_len = min(S + lck, max_position_embeddings)
    if position_ids is None:
        position_ids = jnp.broadcast_to(jnp.arange(S, dtype=jnp.int32)[None, :], (B, S))
    safe_pos = jnp.clip(position_ids + lck, 0, total_seq_len - 1).astype(jnp.float32)
    inv_freq = 1.0 / (rope_base ** (jnp.arange(0, head_dim, 2, dtype=jnp.float32) / head_dim))
    freqs = safe_pos[..., None] * inv_freq[None, None, :]          # (B, S, half)
    cos_half = jnp.cos(freqs)
    sin_half = jnp.sin(freqs)

    # ---- mask handling ----------------------------------------------------
    # NOTE: the torch module adds attention_mask values directly (both 4D and
    # 2D forms) without converting 0/1 padding masks to additive form; we keep
    # that exact behaviour.  `causal=True` (with attention_mask=None) uses the
    # in-kernel causal mask and avoids the (B,S,S) mask DMA entirely.
    if attention_mask is None:
        mask_mode = "causal" if causal else "none"
        mask_arr = None
    elif attention_mask.ndim == 4:                                  # (B, 1, S, S)
        mask_mode = "full"
        mask_arr = attention_mask[:, 0, :, :].astype(jnp.float32)
    elif attention_mask.ndim == 2:                                  # (B, S)
        mask_mode = "full"
        mask_arr = jnp.broadcast_to(
            attention_mask[:, None, :].astype(jnp.float32), (B, S, S))
    else:
        raise ValueError("unsupported attention_mask rank")

    TS = _pick_tile(S, s_tile)
    TQ = _pick_tile(S, q_tile)
    TK = _pick_tile(S, k_tile, lane=(mask_mode == "full"))  # mask block lane dim
    scale = 1.0 / math.sqrt(head_dim)
    nh, nkv = num_heads, num_kv_heads

    # ================= kernel 1: QKV projection + RoPE =====================
    qkv_kernel = functools.partial(
        qkv_rope_kernel, num_kv_heads=nkv, head_dim=head_dim, scale=scale)
    proj_cost = pl.CostEstimate(
        flops=2 * B * S * twoH * (H + 2 * nkv * head_dim),
        transcendentals=0,
        bytes_accessed=int(x.size * 2 + wq_hm.size * 2 + wk_hm.size * 2
                           + wv_hm.size * 2
                           + B * S * (nh + 2 * nkv) * head_dim * 2))

    q_hm, k_hm, v_hm = pl.pallas_call(
        qkv_kernel,
        out_shape=(
            jax.ShapeDtypeStruct((B, nh, S, head_dim), jnp.bfloat16),
            jax.ShapeDtypeStruct((B, nkv, S, head_dim), jnp.bfloat16),
            jax.ShapeDtypeStruct((B, nkv, S, head_dim), jnp.bfloat16),
        ),
        grid=(B, S // TS, nh),
        in_specs=[
            pl.BlockSpec((1, TS, twoH), lambda b, si, h: (b, si, 0)),
            pl.BlockSpec((1, twoH, head_dim), lambda b, si, h: (h, 0, 0)),
            pl.BlockSpec((1, twoH, head_dim),
                         lambda b, si, h: (jnp.minimum(h, nkv - 1), 0, 0)),
            pl.BlockSpec((1, twoH, head_dim),
                         lambda b, si, h: (jnp.minimum(h, nkv - 1), 0, 0)),
            pl.BlockSpec((1, TS, half), lambda b, si, h: (b, si, 0)),
            pl.BlockSpec((1, TS, half), lambda b, si, h: (b, si, 0)),
        ],
        out_specs=(
            pl.BlockSpec((1, 1, TS, head_dim), lambda b, si, h: (b, h, si, 0)),
            pl.BlockSpec((1, 1, TS, head_dim),
                         lambda b, si, h: (b, jnp.minimum(h, nkv - 1), si, 0)),
            pl.BlockSpec((1, 1, TS, head_dim),
                         lambda b, si, h: (b, jnp.minimum(h, nkv - 1), si, 0)),
        ),
        compiler_params=pltpu.CompilerParams(
            dimension_semantics=("parallel", "parallel", "arbitrary"),
            vmem_limit_bytes=32 * 1024 * 1024),
        cost_estimate=proj_cost,
    )(x, wq_hm, wk_hm, wv_hm, cos_half, sin_half)

    # ========== kernel 2: flash attention + fused output projection ========
    flash_kernel = functools.partial(
        flash_attn_oproj_kernel, groups=groups, head_dim=head_dim,
        tq=TQ, tk=TK, mask_mode=mask_mode)

    in_specs = [
        pl.BlockSpec((1, groups, TQ, head_dim), lambda b, qi, g, ki: (b, g, qi, 0)),
        pl.BlockSpec((1, 1, TK, head_dim), lambda b, qi, g, ki: (b, g, ki, 0)),
        pl.BlockSpec((1, 1, TK, head_dim), lambda b, qi, g, ki: (b, g, ki, 0)),
        pl.BlockSpec((groups, head_dim, H), lambda b, qi, g, ki: (g, 0, 0)),
    ]
    inputs = [q_hm, k_hm, v_hm, wo_hm]
    if mask_mode == "full":
        in_specs.append(pl.BlockSpec((1, TQ, TK), lambda b, qi, g, ki: (b, qi, ki)))
        inputs.append(mask_arr)

    attn_cost = pl.CostEstimate(
        flops=4 * B * nh * S * S * head_dim + 2 * B * S * H * H,
        transcendentals=B * nh * S * S,
        bytes_accessed=int(B * S * (nh + 2 * nkv) * head_dim * 2 + wo_hm.size * 2
                           + B * S * H * jnp.dtype(out_dtype).itemsize))

    out = pl.pallas_call(
        flash_kernel,
        out_shape=jax.ShapeDtypeStruct((B, S, H), out_dtype),
        grid=(B, S // TQ, nkv, S // TK),
        in_specs=in_specs,
        out_specs=pl.BlockSpec((1, TQ, H), lambda b, qi, g, ki: (b, qi, 0)),
        scratch_shapes=[
            pltpu.VMEM((groups, TQ, 1), jnp.float32),          # running max
            pltpu.VMEM((groups, TQ, 1), jnp.float32),          # running sum
            pltpu.VMEM((groups, TQ, head_dim), jnp.float32),   # running PV acc
            pltpu.VMEM((TQ, H), jnp.float32),                  # o_proj accumulator
        ],
        compiler_params=pltpu.CompilerParams(
            dimension_semantics=("parallel", "parallel", "arbitrary", "arbitrary"),
            vmem_limit_bytes=32 * 1024 * 1024),
        cost_estimate=attn_cost,
    )(*inputs)
    return out


# --------------------------------------------------------------------------
# Pure-JAX reference (mirror of the torch forward, num_caches == 1 branch)
# --------------------------------------------------------------------------
def reference_forward(x, wq, wk, wv, wo, mask3, *, num_heads, num_kv_heads,
                      max_position_embeddings, position_ids=None, lck=0,
                      rope_base=10000.0):
    B, S, twoH = x.shape
    H = twoH // 2
    hd = H // num_heads
    xf = x.astype(jnp.float32)
    q = (xf @ wq).reshape(B, S, num_heads, hd).transpose(0, 2, 1, 3)
    k = (xf @ wk).reshape(B, S, num_kv_heads, hd).transpose(0, 2, 1, 3)
    v = (xf @ wv).reshape(B, S, num_kv_heads, hd).transpose(0, 2, 1, 3)

    total = min(S + lck, max_position_embeddings)
    if position_ids is None:
        position_ids = jnp.broadcast_to(jnp.arange(S, dtype=jnp.int32)[None, :], (B, S))
    pos = jnp.clip(position_ids + lck, 0, total - 1).astype(jnp.float32)
    inv_freq = 1.0 / (rope_base ** (jnp.arange(0, hd, 2, dtype=jnp.float32) / hd))
    freqs = pos[..., None] * inv_freq[None, None, :]
    emb = jnp.concatenate([freqs, freqs], axis=-1)
    cos = jnp.cos(emb)[:, None]
    sin = jnp.sin(emb)[:, None]

    def rot(t):
        return jnp.concatenate([-t[..., hd // 2:], t[..., :hd // 2]], axis=-1)

    q = q * cos + rot(q) * sin
    k = k * cos + rot(k) * sin
    groups = num_heads // num_kv_heads
    k = jnp.repeat(k, groups, axis=1)
    v = jnp.repeat(v, groups, axis=1)
    scores = jnp.einsum('bhqd,bhkd->bhqk', q, k) / math.sqrt(hd) + mask3[:, None]
    w = jax.nn.softmax(scores.astype(jnp.float32), axis=-1)
    out = jnp.einsum('bhqk,bhkd->bhqd', w, v)
    out = out.transpose(0, 2, 1, 3).reshape(B, S, H)
    return out @ wo


if __name__ == "__main__":
    # Small config consistent with the module: hidden=32, heads=4, kv_heads=2.
    B, S = 2, 8
    hidden_size = 32
    num_heads = 4
    num_kv_heads = 2
    head_dim = hidden_size // num_heads
    max_position_embeddings = 64

    key = jax.random.PRNGKey(0)
    kx, kq, kk, kv, ko = jax.random.split(key, 5)

    # Eagle3: q/k/v projections take 2*hidden_size inputs.
    x = jax.random.normal(kx, (B, S, 2 * hidden_size), dtype=jnp.float32)
    s_in = 1.0 / math.sqrt(2 * hidden_size)
    wq = jax.random.normal(kq, (2 * hidden_size, num_heads * head_dim), jnp.float32) * s_in
    wk = jax.random.normal(kk, (2 * hidden_size, num_kv_heads * head_dim), jnp.float32) * s_in
    wv = jax.random.normal(kv, (2 * hidden_size, num_kv_heads * head_dim), jnp.float32) * s_in
    wo = jax.random.normal(ko, (hidden_size, hidden_size), jnp.float32) / math.sqrt(hidden_size)

    out = llama_eagle3_attention(
        x, wq, wk, wv, wo,
        num_heads=num_heads,
        num_kv_heads=num_kv_heads,
        max_position_embeddings=max_position_embeddings,
        attention_mask=None,
        causal=True,                 # causal mask generated in-kernel
        position_ids=None,
        lck=0,
    )
    out = jax.block_until_ready(out)

    # Reference: explicit additive causal mask.  Inputs are pre-rounded to
    # bf16 (and back) to mirror the kernel's intentional bf16 MXU operands.
    def bf16_round(a):
        return a.astype(jnp.bfloat16).astype(jnp.float32)

    causal_mask = jnp.triu(jnp.full((S, S), -1e9, dtype=jnp.float32), k=1)
    mask3 = jnp.broadcast_to(causal_mask[None], (B, S, S))
    ref = reference_forward(
        bf16_round(x), bf16_round(wq), bf16_round(wk), bf16_round(wv), bf16_round(wo),
        mask3,
        num_heads=num_heads, num_kv_heads=num_kv_heads,
        max_position_embeddings=max_position_embeddings, lck=0,
    )
    ref = jax.block_until_ready(ref)

    assert out.shape == (B, S, hidden_size)
    assert out.dtype == x.dtype
    max_err = float(jnp.max(jnp.abs(out.astype(jnp.float32) - ref)))
    # bf16 intermediates (q/k/v storage, probs, o_proj operands) + approx
    # reciprocal leave a small residual vs. the f32 reference.
    assert max_err < 5e-2, f"mismatch vs reference: {max_err}"
    print("KERNEL_OK")
</pallas_src>

<mosaic_0001>
module attributes {stable_mosaic.version = 11 : i64} {
  func.func @qkv_rope_kernel(%arg0: i32, %arg1: i32, %arg2: i32, %arg3: memref<1x8x64xbf16, #tpu.memory_space<vmem>>, %arg4: memref<1x64x8xbf16, #tpu.memory_space<vmem>>, %arg5: memref<1x64x8xbf16, #tpu.memory_space<vmem>>, %arg6: memref<1x64x8xbf16, #tpu.memory_space<vmem>>, %arg7: memref<1x8x4xf32, #tpu.memory_space<vmem>>, %arg8: memref<1x8x4xf32, #tpu.memory_space<vmem>>, %arg9: memref<1x1x8x8xbf16, #tpu.memory_space<vmem>>, %arg10: memref<1x1x8x8xbf16, #tpu.memory_space<vmem>>, %arg11: memref<1x1x8x8xbf16, #tpu.memory_space<vmem>>) attributes {dimension_semantics = [#tpu.dimension_semantics<parallel>, #tpu.dimension_semantics<parallel>, #tpu.dimension_semantics<arbitrary>], iteration_bounds = array<i64: 2, 1, 4>, scalar_prefetch = 0 : i64, scratch_operands = 0 : i64, tpu.core_type = #tpu.core_type<tc>, window_params = [{transform_indices = @transform_0, window_bounds = array<i64: 1, 8, 64>}, {transform_indices = @transform_1, window_bounds = array<i64: 1, 64, 8>}, {transform_indices = @transform_2, window_bounds = array<i64: 1, 64, 8>}, {transform_indices = @transform_3, window_bounds = array<i64: 1, 64, 8>}, {transform_indices = @transform_4, window_bounds = array<i64: 1, 8, 4>}, {transform_indices = @transform_5, window_bounds = array<i64: 1, 8, 4>}, {transform_indices = @transform_6, window_bounds = array<i64: 1, 1, 8, 8>}, {transform_indices = @transform_7, window_bounds = array<i64: 1, 1, 8, 8>}, {transform_indices = @transform_8, window_bounds = array<i64: 1, 1, 8, 8>}]} {
    %c0 = arith.constant 0 : index
    %c0_0 = arith.constant 0 : index
    %c0_1 = arith.constant 0 : index
    %0 = vector.load %arg3[%c0, %c0_0, %c0_1] : memref<1x8x64xbf16, #tpu.memory_space<vmem>>, vector<1x8x64xbf16>
    %1 = vector.shape_cast %0 : vector<1x8x64xbf16> to vector<8x64xbf16>
    %c0_2 = arith.constant 0 : index
    %c0_3 = arith.constant 0 : index
    %c0_4 = arith.constant 0 : index
    %2 = vector.load %arg7[%c0_2, %c0_3, %c0_4] : memref<1x8x4xf32, #tpu.memory_space<vmem>>, vector<1x8x4xf32>
    %3 = vector.shape_cast %2 : vector<1x8x4xf32> to vector<8x4xf32>
    %c0_5 = arith.constant 0 : index
    %c0_6 = arith.constant 0 : index
    %c0_7 = arith.constant 0 : index
    %4 = vector.load %arg8[%c0_5, %c0_6, %c0_7] : memref<1x8x4xf32, #tpu.memory_space<vmem>>, vector<1x8x4xf32>
    %5 = vector.shape_cast %4 : vector<1x8x4xf32> to vector<8x4xf32>
    %c0_8 = arith.constant 0 : index
    %c0_9 = arith.constant 0 : index
    %c0_10 = arith.constant 0 : index
    %6 = vector.load %arg4[%c0_8, %c0_9, %c0_10] : memref<1x64x8xbf16, #tpu.memory_space<vmem>>, vector<1x64x8xbf16>
    %7 = vector.shape_cast %6 : vector<1x64x8xbf16> to vector<64x8xbf16>
    %cst = arith.constant dense<0.000000e+00> : vector<8x8xf32>
    %8 = tpu.matmul %1, %7, %cst {dimension_numbers = #tpu.dot_dimension_numbers<[1], [0], [0], [1], [0, 0, 1, 1], [], []>} : vector<8x64xbf16>, vector<64x8xbf16>, vector<8x8xf32> -> vector<8x8xf32>
    %9 = vector.extract_strided_slice %8 {offsets = [0, 0], sizes = [8, 4], strides = [1, 1]} : vector<8x8xf32> to vector<8x4xf32>
    %10 = vector.extract_strided_slice %8 {offsets = [0, 4], sizes = [8, 4], strides = [1, 1]} : vector<8x8xf32> to vector<8x4xf32>
    %cst_11 = arith.constant 0.353553385 : f32
    %11 = vector.broadcast %cst_11 : f32 to vector<8x4xf32>
    %12 = arith.mulf %3, %11 : vector<8x4xf32>
    %cst_12 = arith.constant 0.353553385 : f32
    %13 = vector.broadcast %cst_12 : f32 to vector<8x4xf32>
    %14 = arith.mulf %5, %13 : vector<8x4xf32>
    %15 = arith.mulf %9, %12 : vector<8x4xf32>
    %16 = arith.mulf %10, %14 : vector<8x4xf32>
    %17 = arith.subf %15, %16 : vector<8x4xf32>
    %18 = arith.truncf %17 : vector<8x4xf32> to vector<8x4xbf16>
    %c0_13 = arith.constant 0 : index
    %c0_14 = arith.constant 0 : index
    %c0_15 = arith.constant 0 : index
    %c0_16 = arith.constant 0 : index
    %19 = vector.load %arg9[%c0_13, %c0_14, %c0_15, %c0_16] : memref<1x1x8x8xbf16, #tpu.memory_space<vmem>>, vector<1x1x8x4xbf16>
    %20 = vector.shape_cast %19 : vector<1x1x8x4xbf16> to vector<8x4xbf16>
    %21 = vector.shape_cast %18 : vector<8x4xbf16> to vector<1x1x8x4xbf16>
    tpu.vector_store %arg9[%c0_13, %c0_14, %c0_15, %c0_16], %21 {strides = array<i32>} : memref<1x1x8x8xbf16, #tpu.memory_space<vmem>>, vector<1x1x8x4xbf16>,
    %22 = arith.mulf %10, %12 : vector<8x4xf32>
    %23 = arith.mulf %9, %14 : vector<8x4xf32>
    %24 = arith.addf %22, %23 : vector<8x4xf32>
    %25 = arith.truncf %24 : vector<8x4xf32> to vector<8x4xbf16>
    %c0_17 = arith.constant 0 : index
    %c0_18 = arith.constant 0 : index
    %c0_19 = arith.constant 0 : index
    %c4 = arith.constant 4 : index
    %26 = vector.load %arg9[%c0_17, %c0_18, %c0_19, %c4] : memref<1x1x8x8xbf16, #tpu.memory_space<vmem>>, vector<1x1x8x4xbf16>
    %27 = vector.shape_cast %26 : vector<1x1x8x4xbf16> to vector<8x4xbf16>
    %28 = vector.shape_cast %25 : vector<8x4xbf16> to vector<1x1x8x4xbf16>
    tpu.vector_store %arg9[%c0_17, %c0_18, %c0_19, %c4], %28 {strides = array<i32>} : memref<1x1x8x8xbf16, #tpu.memory_space<vmem>>, vector<1x1x8x4xbf16>,
    %c2_i32 = arith.constant 2 : i32
    %29 = arith.cmpi slt, %arg2, %c2_i32 : i32
    %30 = arith.extui %29 : i1 to i32
    %c0_i32 = arith.constant 0 : i32
    %31 = arith.cmpi ne, %30, %c0_i32 : i32
    scf.if %31 {
      %c0_20 = arith.constant 0 : index
      %c0_21 = arith.constant 0 : index
      %c0_22 = arith.constant 0 : index
      %32 = vector.load %arg5[%c0_20, %c0_21, %c0_22] : memref<1x64x8xbf16, #tpu.memory_space<vmem>>, vector<1x64x8xbf16>
      %33 = vector.shape_cast %32 : vector<1x64x8xbf16> to vector<64x8xbf16>
      %cst_23 = arith.constant dense<0.000000e+00> : vector<8x8xf32>
      %34 = tpu.matmul %1, %33, %cst_23 {dimension_numbers = #tpu.dot_dimension_numbers<[1], [0], [0], [1], [0, 0, 1, 1], [], []>} : vector<8x64xbf16>, vector<64x8xbf16>, vector<8x8xf32> -> vector<8x8xf32>
      %c0_24 = arith.constant 0 : index
      %c0_25 = arith.constant 0 : index
      %c0_26 = arith.constant 0 : index
      %35 = vector.load %arg6[%c0_24, %c0_25, %c0_26] : memref<1x64x8xbf16, #tpu.memory_space<vmem>>, vector<1x64x8xbf16>
      %36 = vector.shape_cast %35 : vector<1x64x8xbf16> to vector<64x8xbf16>
      %cst_27 = arith.constant dense<0.000000e+00> : vector<8x8xf32>
      %37 = tpu.matmul %1, %36, %cst_27 {dimension_numbers = #tpu.dot_dimension_numbers<[1], [0], [0], [1], [0, 0, 1, 1], [], []>} : vector<8x64xbf16>, vector<64x8xbf16>, vector<8x8xf32> -> vector<8x8xf32>
      %38 = vector.extract_strided_slice %34 {offsets = [0, 0], sizes = [8, 4], strides = [1, 1]} : vector<8x8xf32> to vector<8x4xf32>
      %39 = vector.extract_strided_slice %34 {offsets = [0, 4], sizes = [8, 4], strides = [1, 1]} : vector<8x8xf32> to vector<8x4xf32>
      %40 = arith.mulf %38, %3 : vector<8x4xf32>
      %41 = arith.mulf %39, %5 : vector<8x4xf32>
      %42 = arith.subf %40, %41 : vector<8x4xf32>
      %43 = arith.truncf %42 : vector<8x4xf32> to vector<8x4xbf16>
      %c0_28 = arith.constant 0 : index
      %c0_29 = arith.constant 0 : index
      %c0_30 = arith.constant 0 : index
      %c0_31 = arith.constant 0 : index
      %44 = vector.load %arg10[%c0_28, %c0_29, %c0_30, %c0_31] : memref<1x1x8x8xbf16, #tpu.memory_space<vmem>>, vector<1x1x8x4xbf16>
      %45 = vector.shape_cast %44 : vector<1x1x8x4xbf16> to vector<8x4xbf16>
      %46 = vector.shape_cast %43 : vector<8x4xbf16> to vector<1x1x8x4xbf16>
      tpu.vector_store %arg10[%c0_28, %c0_29, %c0_30, %c0_31], %46 {strides = array<i32>} : memref<1x1x8x8xbf16, #tpu.memory_space<vmem>>, vector<1x1x8x4xbf16>,
      %47 = arith.mulf %39, %3 : vector<8x4xf32>
      %48 = arith.mulf %38, %5 : vector<8x4xf32>
      %49 = arith.addf %47, %48 : vector<8x4xf32>
      %50 = arith.truncf %49 : vector<8x4xf32> to vector<8x4xbf16>
      %c0_32 = arith.constant 0 : index
      %c0_33 = arith.constant 0 : index
      %c0_34 = arith.constant 0 : index
      %c4_35 = arith.constant 4 : index
      %51 = vector.load %arg10[%c0_32, %c0_33, %c0_34, %c4_35] : memref<1x1x8x8xbf16, #tpu.memory_space<vmem>>, vector<1x1x8x4xbf16>
      %52 = vector.shape_cast %51 : vector<1x1x8x4xbf16> to vector<8x4xbf16>
      %53 = vector.shape_cast %50 : vector<8x4xbf16> to vector<1x1x8x4xbf16>
      tpu.vector_store %arg10[%c0_32, %c0_33, %c0_34, %c4_35], %53 {strides = array<i32>} : memref<1x1x8x8xbf16, #tpu.memory_space<vmem>>, vector<1x1x8x4xbf16>,
      %54 = arith.truncf %37 : vector<8x8xf32> to vector<8x8xbf16>
      %c0_36 = arith.constant 0 : index
      %c0_37 = arith.constant 0 : index
      %c0_38 = arith.constant 0 : index
      %c0_39 = arith.constant 0 : index
      %55 = vector.load %arg11[%c0_36, %c0_37, %c0_38, %c0_39] : memref<1x1x8x8xbf16, #tpu.memory_space<vmem>>, vector<1x1x8x8xbf16>
      %56 = vector.shape_cast %55 : vector<1x1x8x8xbf16> to vector<8x8xbf16>
      %57 = vector.shape_cast %54 : vector<8x8xbf16> to vector<1x1x8x8xbf16>
      tpu.vector_store %arg11[%c0_36, %c0_37, %c0_38, %c0_39], %57 {strides = array<i32>} : memref<1x1x8x8xbf16, #tpu.memory_space<vmem>>, vector<1x1x8x8xbf16>,
    } else {
    }
    return
  }
  func.func @transform_0(%arg0: i32, %arg1: i32, %arg2: i32) -> (i32, i32, i32) {
    %c0_i32 = arith.constant 0 : i32
    %c0_i32_0 = arith.constant 0 : i32
    return %arg0, %arg1, %c0_i32 : i32, i32, i32
  }
  func.func @transform_1(%arg0: i32, %arg1: i32, %arg2: i32) -> (i32, i32, i32) {
    %c0_i32 = arith.constant 0 : i32
    %c0_i32_0 = arith.constant 0 : i32
    %c0_i32_1 = arith.constant 0 : i32
    return %arg2, %c0_i32, %c0_i32_0 : i32, i32, i32
  }
  func.func @transform_2(%arg0: i32, %arg1: i32, %arg2: i32) -> (i32, i32, i32) {
    %c1_i32 = arith.constant 1 : i32
    %0 = arith.minsi %arg2, %c1_i32 : i32
    %c0_i32 = arith.constant 0 : i32
    %c0_i32_0 = arith.constant 0 : i32
    %c0_i32_1 = arith.constant 0 : i32
    return %0, %c0_i32, %c0_i32_0 : i32, i32, i32
  }
  func.func @transform_3(%arg0: i32, %arg1: i32, %arg2: i32) -> (i32, i32, i32) {
    %c1_i32 = arith.constant 1 : i32
    %0 = arith.minsi %arg2, %c1_i32 : i32
    %c0_i32 = arith.constant 0 : i32
    %c0_i32_0 = arith.constant 0 : i32
    %c0_i32_1 = arith.constant 0 : i32
    return %0, %c0_i32, %c0_i32_0 : i32, i32, i32
  }
  func.func @transform_4(%arg0: i32, %arg1: i32, %arg2: i32) -> (i32, i32, i32) {
    %c0_i32 = arith.constant 0 : i32
    %c0_i32_0 = arith.constant 0 : i32
    return %arg0, %arg1, %c0_i32 : i32, i32, i32
  }
  func.func @transform_5(%arg0: i32, %arg1: i32, %arg2: i32) -> (i32, i32, i32) {
    %c0_i32 = arith.constant 0 : i32
    %c0_i32_0 = arith.constant 0 : i32
    return %arg0, %arg1, %c0_i32 : i32, i32, i32
  }
  func.func @transform_6(%arg0: i32, %arg1: i32, %arg2: i32) -> (i32, i32, i32, i32) {
    %c0_i32 = arith.constant 0 : i32
    %c0_i32_0 = arith.constant 0 : i32
    return %arg0, %arg2, %arg1, %c0_i32 : i32, i32, i32, i32
  }
  func.func @transform_7(%arg0: i32, %arg1: i32, %arg2: i32) -> (i32, i32, i32, i32) {
    %c1_i32 = arith.constant 1 : i32
    %0 = arith.minsi %arg2, %c1_i32 : i32
    %c0_i32 = arith.constant 0 : i32
    %c0_i32_0 = arith.constant 0 : i32
    return %arg0, %0, %arg1, %c0_i32 : i32, i32, i32, i32
  }
  func.func @transform_8(%arg0: i32, %arg1: i32, %arg2: i32) -> (i32, i32, i32, i32) {
    %c1_i32 = arith.constant 1 : i32
    %0 = arith.minsi %arg2, %c1_i32 : i32
    %c0_i32 = arith.constant 0 : i32
    %c0_i32_0 = arith.constant 0 : i32
    return %arg0, %0, %arg1, %c0_i32 : i32, i32, i32, i32
  }
}

</mosaic_0001>

<bundles_post_ra>
// kernel: tpu_custom_call.1
= control target key start
LH: loop header
LB: loop body
LE: loop exit
PB: predicated region body
PF: predicated region fallthrough
CT: control target
= control target key end

     0   :  { %s1865_s0 = inlined_call_operand.vmem [shape: bf16[2,8,64], index: 0, kind: input, shape index: {}]   ;;  %s1866_s1 = inlined_call_operand.vmem [shape: bf16[4,64,8], index: 1, kind: input, shape index: {}]   ;;  %s1867_s2 = inlined_call_operand.vmem [shape: bf16[2,64,8], index: 2, kind: input, shape index: {}]   ;;  %s1868_s3 = inlined_call_operand.vmem [shape: bf16[2,64,8], index: 3, kind: input, shape index: {}]   ;;  %s1869_s4 = inlined_call_operand.vmem [shape: f32[2,8,4], index: 4, kind: input, shape index: {}]   ;;  %s1870_s5 = inlined_call_operand.vmem [shape: f32[2,8,4], index: 5, kind: input, shape index: {}]   ;;  %s1871_s6 = inlined_call_operand.hbm [shape: bf16[2,4,8,8], index: 6, kind: output, shape index: {0}]   ;;  %s1872_s7 = inlined_call_operand.hbm [shape: bf16[2,2,8,8], index: 7, kind: output, shape index: {1}]   ;;  %s1873_s8 = inlined_call_operand.hbm [shape: bf16[2,2,8,8], index: 8, kind: output, shape index: {2}]  }
   0x1   :  { %1891 = sst [smem:[#allocation20_spill]] %s1865_s0 }
   0x2   :  { %1892 = sst [smem:[#allocation21_spill]] %s1866_s1 }
   0x3   :  { %1893 = sst [smem:[#allocation22_spill]] %s1867_s2 }
   0x4   :  { %1894 = sst [smem:[#allocation23_spill]] %s1868_s3 }
   0x5   :  { %1895 = sst [smem:[#allocation24_spill]] %s1869_s4 }
   0x6   :  { %1896 = sst [smem:[#allocation25_spill]] %s1870_s5 }
   0x7   :  { %1897 = sst [smem:[#allocation26_spill]] %s1871_s6 }
   0x8   :  { %1898 = sst [smem:[#allocation27_spill]] %s1872_s7 }
   0x9   :  { %1899 = sst [smem:[#allocation28_spill]] %s1873_s8 }
   0xa   :  { %14 = vsyncpa [#allocation3], 0 }
   0xb   :  { %16 = vsyncpa [#allocation3 + $0x1], 0 }
   0xc   :  { %17 = vsyncpa [#allocation5], 0 }
   0xd   :  { %19 = vsyncpa [#allocation5 + $0x1], 0  ;;  %s1538_s27 = smov 0   ;;  %s1540_s28 = smov 0  }
   0xe   :  { %s1542_s29 = smov 0   ;;  %s1544_s30 = smov 0  }
   0xf   :  { %s1546_s9 = smov 0   ;;  %s1548_s10 = smov 0  }
  0x10   :  { %s1550_s11 = smov 0   ;;  %s1552_s12 = smov 0  }
  0x11   :  { %s1554_s13 = smov 0   ;;  %s1556_s14 = smov 0  }
  0x12   :  { %s1558_s15 = smov 0  }
  0x13 LB: > { %1900 = sst [smem:[#allocation9_spill]] %s1448_s29  ;;  %s1874_s16 = sadd.s32 4294967295, %s1480_s15   ;;  %s1480_s15 = sphi %s1558_s15, %s25_s15   ;;  %s1476_s14 = sphi %s1556_s14, %s1943_s14   ;;  %s1472_s13 = sphi %s1554_s13, %s1942_s13   ;;  %s1468_s12 = sphi %s1552_s12, %s1941_s12   ;;  %s1464_s11 = sphi %s1550_s11, %s1940_s11   ;;  %s1460_s10 = sphi %s1548_s10, %s1939_s10   ;;  %s1456_s9 = sphi %s1546_s9, %s1947_s9   ;;  %s1452_s30 = sphi %s1544_s30, %s1946_s30   ;;  %s1448_s29 = sphi %s1542_s29, %s1937_s29   ;;  %s1444_s28 = sphi %s1540_s28, %s1945_s28   ;;  %s1440_s27 = sphi %s1538_s27, %s1944_s27  }
  0x14   : > { %1901 = sst [smem:[#allocation10_spill]] %s1452_s30  ;;  %s1875_s17 = sadd.s32 4294967294, %s1480_s15  }
  0x15   : > { %1902 = sst [smem:[#allocation11_spill]] %s1460_s10  ;;  %s37_s18 = sadd.s32 1, %s1472_s13 }
  0x16   : > { %1903 = sst [smem:[#allocation12_spill]] %s1472_s13  ;;  %s44_s19 = sadd.s32 1, %s1476_s14 }
  0x17   : > { %1904 = sst [smem:[#allocation13_spill]] %s1476_s14  ;;  %p38_p0 = scmp.ge.s32.totalorder %s37_s18, 4 }
  0x18   : > { %s225_s20 = sadd.s32 1, %s1460_s10  ;;  %p235_p1 = scmp.ne.s32.totalorder %s1460_s10, %s1456_s9 }
  0x19   : > { %p1602_p2 = scmp.eq.s32.totalorder %s1874_s16, 7  ;;  %s1949_s18 = smov (%p38_p0, %s37_s18), 0 }
  0x1a   : > { %1906 = sst [smem:[#allocation14_spill]] %s1949_s18  ;;  %s1951_s19 = smov (!%p38_p0, %s44_s19), %s1476_s14 }
  0x1b   : > { %s219_s22 = ssub.s32 %s1472_s13, %s1949_s18  ;;  %p1613_p3 = por %p1602_p2, %p235_p1 }
  0x1c   : > { %p46_p4 = scmp.ge.s32.totalorder %s1951_s19, 2  ;;  %p241_p5 = scmp.ne.s32.totalorder %s1456_s9, %s1452_s30 }
  0x1d   : > { %s1907_s23 = scalar_select %p1613_p3, 1, 0 }
  0x1e   : > { %p1621_p6 = scmp.eq.s32.totalorder %s1875_s17, 7  ;;  %p248_p7 = scmp.lt.s32.totalorder %s1472_s13, 1 }
  0x1f   : > { %1908 = sst [smem:[#allocation15_spill]] %s1907_s23  ;;  %s1953_s19 = smov (%p46_p4, %s1951_s19), 0 }
  0x20   : > { %1910 = sst [smem:[#allocation16_spill]] %s1953_s19  ;;  %p1630_p8 = por %p1621_p6, %p241_p5 }
  0x21   : > { %p250_p9 = scmp.lt.s32.totalorder %s1949_s18, 1  ;;  %s218_s26 = ssub.s32 %s1476_s14, %s1953_s19 }
  0x22   : > { %s1911_s25 = scalar_select %p1630_p8, 1, 0 }
  0x23   : > { %s259_s16 = sadd.s32 1, %s1448_s29  ;;  %s220_s17 = sor.u32 %s219_s22, %s218_s26 }
  0x24   : > { %1912 = sst [smem:[#allocation17_spill]] %s1911_s25  ;;  %p269_p10 = scmp.ne.s32.totalorder %s1448_s29, %s1444_s28 }
  0x25   : > { %p223_p11 = scmp.eq.s32.totalorder %s220_s17, 0  ;;  %p275_p12 = scmp.ne.s32.totalorder %s1444_s28, %s1440_s27 }
  0x26   : > { %s249_s30 = scalar_select %p248_p7, %s1472_s13, 1 }
  0x27   : > { %s1644_s8 = scalar_select %p223_p11, %s1460_s10, %s225_s20  }
  0x28   : > { %s251_s6 = scalar_select %p250_p9, %s1949_s18, 1 }
  0x29   : > { %1913 = sst [smem:[#allocation18_spill]] %s1644_s8  ;;  %p1649_p13 = por %p269_p10, %p1602_p2 }
  0x2a   : > { %p1655_p0 = por %p275_p12, %p1621_p6  ;;  %s253_s19 = ssub.s32 %s249_s30, %s251_s6 }
  0x2b   : > { %p1083_p1 = scmp.ge.s32.totalorder %s1480_s15, 1  ;;  %s254_s22 = sor.u32 %s253_s19, %s218_s26 }
  0x2c   : > { %s1915_s25 = scalar_select %p1655_p0, 1, 0 }
  0x2d   : > { %p390_p4 = scmp.lt.s32.totalorder %s1480_s15, 9  ;;  %p257_p5 = scmp.eq.s32.totalorder %s254_s22, 0 }
  0x2f   : > { %p391_p8 = pnand %p1083_p1, %p390_p4 }
  0x30   : > { %s1662_s27 = scalar_select %p257_p5, %s1448_s29, %s259_s16  }
  0x31   : > { %394 = sbr.rel (%p391_p8) target bundleno = 807 (0x327), region = 44  ;;  %s459_s17 = sand.u32 (!%p391_p8), 1, %s1444_s28  }
  0x32   : > { %1916 = sst [smem:[#allocation19_spill]] %s1662_s27  ;;  %p481_p2 = scmp.lt.s32.totalorder (!%p391_p8), %s1464_s11, 1 }
  0x33   : > { %s1666_s20 = sshll.u32 (!%p391_p8), %s459_s17, 2  ;;  %p476_p6 = scmp.lt.s32.totalorder (!%p391_p8), %s1464_s11, 3 }
  0x34   : > { %p469_p7 = scmp.lt.s32.totalorder (!%p391_p8), %s1468_s12, 1  ;;  %s1917_s1 = sld [smem:[#allocation21_spill]] (!%p391_p8) }
  0x35   : > { %s1918_s2 = sld [smem:[#allocation22_spill]] (!%p391_p8)  ;;  %s1484_s13 = smov (!%p391_p8), 4  }
  0x36   : > { %v1482_v0 = vmov 0.0   ;;  %vm1483_vm0 = vmmov 0   ;;  %s1670_s6 = scalar_select %p481_p2, %s1464_s11, 1  ;;  %vm553_vm1 = vcmask 523264   ;;  %vm611_vm2 = vcmask 27648  }
  0x37   : > { %1147 = vmatprep.subr.bf16.mxu0 %v1482_v0  ;;  %1155 = vmatprep.mubr.msk.bf16.mxu0 %vm1483_vm0, %v1482_v0  ;;  %s477_s30 = scalar_select %p476_p6, %s1464_s11, 3  ;;  %vm625_vm3 = vcmask 60448  }
  0x38   : > { %s484_s16 = scalar_select %p481_p2, %s1670_s6, 1 }
  0x39   : > { %s1129_s19 = sshll.u32 %s477_s30, 5  ;;  %s1919_s3 = sld [smem:[#allocation23_spill]] }
  0x3a   : > { %s1130_s21 = sshll.u32 %s484_s16, 5  ;;  %s480_s22 = scalar_lea.vmem %s1917_s1, %s1129_s19 }
  0x3b   : > { %s1681_s14 = scalar_lea.vmem %s1918_s2, %s1130_s21  ;;  %v1296_v1 = vld [vmem:[%s480_s22 + $0x18] sm:$0xff]   ;;  %v1297_v2 = vld [vmem:[%s480_s22 + $0x10] sm:$0xff]   ;;  %s1920_s5 = sld [smem:[#allocation25_spill]]  ;;  %v1298_v3 = vld [vmem:[%s480_s22 + $0x8] sm:$0xff]  }
  0x3c   : > { %1148 = vmatpush3.bf16.msra.mxu0 %v1296_v1  ;;  %s470_s30 = scalar_select %p469_p7, %s1468_s12, 1  ;;  %v1299_v8 = vld [vmem:[%s480_s22] sm:$0xff]  }
  0x3d   : > { %1149 = vmatprep.subr.bf16.mxu0 %v1482_v0  ;;  %s1921_s4 = sld [smem:[#allocation24_spill]]  ;;  %s1485_s22 = smov 124  }
  0x3e   : > { %s1100_s16 = sshll.u32 %s470_s30, 3  ;;  %s1087_s8 = sshll.u32 %s470_s30, 2 }
  0x3f   : > { %s1686_s10 = scalar_lea.vmem %s1919_s3, %s1130_s21  ;;  %s1922_s0 = sld [smem:[#allocation20_spill]] }
  0x40   : > { %1150 = vmatpush3.bf16.msra.mxu0 %v1297_v2  ;;  %s1889_s17 = sand.u32 1, %s1456_s9   ;;  %s1888_s24 = scalar_lea.vmem [#allocation6], %s1666_s20 }
  0x41   : > { %s512_s19 = scalar_lea.vmem %s1920_s5, %s1100_s16  ;;  %1151 = vmatprep.subr.bf16.mxu0 %v1482_v0  ;;  %s1084_s30 = sshll.u32 %s1889_s17, 2 }
  0x42   : > { %v1695_v4 = vld [vmem:[%s512_s19] sm:$0xff]  ;;  %s1718_s19 = scalar_lea.vmem [#allocation4], %s1666_s20  ;;  %p1107_p8 = scmp.ge.s32.totalorder %s1464_s11, 2 }
  0x43   : > { %s505_s18 = scalar_lea.vmem %s1921_s4, %s1100_s16  ;;  %v598_v6 = vmul.f32 0.35355338, %v1695_v4  ;;  %s1711_s16 = scalar_lea.vmem [#allocation2], %s1084_s30 }
  0x44   : > { %v1697_v5 = vld [vmem:[%s505_s18] sm:$0xff]  ;;  %1152 = vmatpush3.bf16.msra.mxu0 %v1298_v3  ;;  %s1488_s26 = smov (!%p1107_p8), 4  }
  0x45   : > { %601 = vrot.lane.b32.xlu0 %v598_v6, %s1484_s13  ;;  %v597_v7 = vmul.f32 0.35355338, %v1697_v5  ;;  %1153 = vmatprep.subr.bf16.mxu0 %v1482_v0  ;;  %s475_s21 = scalar_lea.vmem %s1922_s0, %s1087_s8 }
  0x46   : > { %v1704_v9 = vld [vmem:[%s475_s21] sm:$0xf] }
  0x48   : > { %1154 = vmatpush3.bf16.msra.mxu0 %v1299_v8 }
  0x49   : > { %614 = vrot.lane.b32.xlu0 %v597_v7, %s1484_s13 }
  0x4b   : > { %1156 = vmatmul.mubr.msk.bf16.vlgmr.msra.gmra.mxu0 %vm553_vm1, %v1704_v9 }
  0xb7   : > { %v602_v10 = vpop.permute.xlu0 %601 }
  0xbb   : > { %v615_v18 = vpop.permute.xlu0 %614 }
 0x10b   : > { %v591_v11 = vpop.f32.mrf.mxu0 }
 0x10c   : > { %v604_v12 = vmul.f32 %v602_v10, %v591_v11  ;;  %v618_v15 = vmul.f32 %v598_v6, %v591_v11  ;;  %v599_v17 = vmul.f32 %v597_v7, %v591_v11  ;;  %v617_v22 = vmul.f32 %v615_v18, %v591_v11 }
 0x10d   : > { %v1157_v13 = vpop.f32.mrf.mxu0 }
 0x10e   : > { %606 = vrot.lane.b32.xlu1 %v604_v12, %s1485_s22 }
 0x10f   : > { %v594_v14 = vpop.f32.mrf.mxu0 }
 0x111   : > { %v1158_v16 = vpop.f32.mrf.mxu0 }
 0x112   : > { %620 = vrot.lane.b32.xlu1 %v618_v15, %s1484_s13 }
 0x180   : > { %v607_v19 = vpop.permute.xlu1 %606 }
 0x181   : > { %v609_v20 = vsub.f32 %v599_v17, %v607_v19 }
 0x183   : > { %v610_v21 = vpack.c.bf16 %v609_v20, %v609_v20 }
 0x184   : > { %v621_v23 = vpop.permute.xlu1 %620 }
 0x185   : > { %612 = vst.msk [vmem:[%s1711_s16] sm:$0xf] %vm611_vm2, %v610_v21  ;;  %v623_v24 = vadd.f32 %v621_v23, %v617_v22  ;;  %630 = sbr.rel (%p1107_p8) target bundleno = 730 (0x2da), region = 48 }
 0x187   : > { %v624_v25 = vpack.c.bf16 %v623_v24, %v623_v24 }
 0x189   : > { %626 = vst.msk [vmem:[%s1711_s16] sm:$0xf] %vm625_vm3, %v624_v25 }
 0x18a   : > { %v1300_v26 = vld [vmem:[%s1681_s14 + $0x18] sm:$0xff]   ;;  %v1486_v27 = vmov 0.0   ;;  %v1301_v28 = vld [vmem:[%s1681_s14 + $0x10] sm:$0xff]   ;;  %vm1487_vm4 = vmmov 0   ;;  %777 = vrot.lane.b32.xlu0 %v1695_v4, %s1488_s26  ;;  %v1302_v30 = vld [vmem:[%s1681_s14 + $0x8] sm:$0xff]   ;;  %vm802_vm5 = vcmask 60416  }
 0x18b   : > { %1159 = vmatprep.subr.bf16.mxu0 %v1486_v27  ;;  %1171 = vmatprep.subr.bf16.mxu1 %v1486_v27  ;;  %v1304_v29 = vld [vmem:[%s1686_s10 + $0x18] sm:$0xff]   ;;  %v1305_v31 = vld [vmem:[%s1686_s10 + $0x10] sm:$0xff]   ;;  %v1303_v32 = vld [vmem:[%s1681_s14] sm:$0xff]   ;;  %s1489_s14 = smov 124  }
 0x18c   : > { %1160 = vmatpush3.bf16.msra.mxu0 %v1300_v26  ;;  %1167 = vmatprep.mubr.msk.bf16.mxu0 %vm1487_vm4, %v1486_v27  ;;  %v1306_v33 = vld [vmem:[%s1686_s10 + $0x8] sm:$0xff]   ;;  %v1307_v34 = vld [vmem:[%s1686_s10] sm:$0xff]  }
 0x18d   : > { %1161 = vmatprep.subr.bf16.mxu0 %v1486_v27  ;;  %1179 = vmatprep.mubr.msk.bf16.mxu1 %vm1487_vm4, %v1486_v27 }
 0x18e   : > { %1172 = vmatpush3.bf16.msra.mxu1 %v1304_v29  ;;  %789 = vrot.lane.b32.xlu0 %v1697_v5, %s1488_s26 }
 0x18f   : > { %1173 = vmatprep.subr.bf16.mxu1 %v1486_v27 }
 0x190   : > { %1162 = vmatpush3.bf16.msra.mxu0 %v1301_v28 }
 0x191   : > { %1163 = vmatprep.subr.bf16.mxu0 %v1486_v27 }
 0x192   : > { %1174 = vmatpush3.bf16.msra.mxu1 %v1305_v31 }
 0x193   : > { %1175 = vmatprep.subr.bf16.mxu1 %v1486_v27 }
 0x194   : > { %1164 = vmatpush3.bf16.msra.mxu0 %v1302_v30 }
 0x195   : > { %1165 = vmatprep.subr.bf16.mxu0 %v1486_v27 }
 0x196   : > { %1176 = vmatpush3.bf16.msra.mxu1 %v1306_v33 }
 0x197   : > { %1177 = vmatprep.subr.bf16.mxu1 %v1486_v27 }
 0x198   : > { %1166 = vmatpush3.bf16.msra.mxu0 %v1303_v32 }
 0x19a   : > { %1178 = vmatpush3.bf16.msra.mxu1 %v1307_v34 }
 0x19b   : > { %1168 = vmatmul.mubr.msk.bf16.vlgmr.msra.gmra.mxu0 %vm553_vm1, %v1704_v9 }
 0x19d   : > { %1180 = vmatmul.mubr.msk.bf16.vlgmr.msra.gmra.mxu1 %vm553_vm1, %v1704_v9 }
 0x1fc   : > { %v778_v35 = vpop.permute.xlu0 %777 }
 0x200   : > { %v790_v48 = vpop.permute.xlu0 %789 }
 0x25b   : > { %v697_v36 = vpop.f32.mrf.mxu0 }
 0x25c   : > { %v780_v37 = vmul.f32 %v778_v35, %v697_v36  ;;  %v793_v41 = vmul.f32 %v697_v36, %v1695_v4  ;;  %v775_v47 = vmul.f32 %v697_v36, %v1697_v5  ;;  %v792_v52 = vmul.f32 %v790_v48, %v697_v36 }
 0x25d   : > { %v1169_v38 = vpop.f32.mrf.mxu0  ;;  %v769_v40 = vpop.f32.mrf.mxu1 }
 0x25e   : > { %782 = vrot.lane.b32.xlu1 %v780_v37, %s1489_s14  ;;  %v801_v42 = vpack.c.bf16 %v769_v40, %v769_v40 }
 0x25f   : > { %v700_v39 = vpop.f32.mrf.mxu0  ;;  %v1181_v44 = vpop.f32.mrf.mxu1 }
 0x260   : > { %803 = vst.msk [vmem:[%s1888_s24] sm:$0xf] %vm802_vm5, %v801_v42 }
 0x261   : > { %v1170_v43 = vpop.f32.mrf.mxu0  ;;  %v772_v45 = vpop.f32.mrf.mxu1 }
 0x262   : > { %795 = vrot.lane.b32.xlu1 %v793_v41, %s1488_s26 }
 0x263   : > { %v1182_v46 = vpop.f32.mrf.mxu1 }
 0x2d0   : > { %v783_v49 = vpop.permute.xlu1 %782 }
 0x2d1   : > { %v785_v50 = vsub.f32 %v775_v47, %v783_v49 }
 0x2d3   : > { %v786_v51 = vpack.c.bf16 %v785_v50, %v785_v50 }
 0x2d4   : > { %v796_v53 = vpop.permute.xlu1 %795 }
 0x2d5   : > { %787 = vst.msk [vmem:[%s1718_s19] sm:$0xf] %vm611_vm2, %v786_v51  ;;  %v798_v54 = vadd.f32 %v796_v53, %v792_v52 }
 0x2d7   : > { %v799_v55 = vpack.c.bf16 %v798_v54, %v798_v54 }
 0x2d9   : > { %800 = vst.msk [vmem:[%s1718_s19] sm:$0xf] %vm625_vm3, %v799_v55 }
 0x2da PF: > { %s1923_s10 = sadd.s32 4294967295, %s1480_s15   ;;  %s1123_s8 = sshll.u32 %s1468_s12, 1 }
 0x2db   : > { %s1749_s18 = sand.u32 1, %s1923_s10   ;;  %s1753_s13 = sadd.s32 %s1123_s8, %s1670_s6 }
 0x2dc   : > { %s1890_s29 = sshll.u32 %s1753_s13, 6  ;;  %s849_s27 = sshll.u32 %s1718_s19, 4  ;;  %s850_s27 = int_to_ptr.vmem [resolvable:$true] %s849_s27 }
 0x2dd   : > { %s1924_s7 = sld [smem:[#allocation27_spill]]  ;;  %s810_s26 = scalar_lea.sflag [#allocation5], %s1749_s18 }
 0x2de   : > { %s1308_s14 = scalar_lea.vmem %s850_s27, 64  ;;  %s1490_s10 = smov [#allocation4]  }
 0x2df   : > { %p1309_p9 = scmp.ne.s32.totalorder %s850_s27, %s1308_s14  ;;  %s1312_s24 = sshll.u32 %s1490_s10, 4  ;;  %s1313_s24 = int_to_ptr.vmem [resolvable:$false] %s1312_s24 }
 0x2e0   : > { %s1314_s6 = scalar_lea.vmem %s1313_s24, 128  ;;  %p1315_p12 = scmp.lt.s32.totalorder %s850_s27, %s1313_s24 }
 0x2e1   : > { %p1310_p10 = pnand %p1309_p9, %p1649_p13  ;;  %p1316_p1 = scmp.lt.s32.totalorder %s1314_s6, %s1308_s14 }
 0x2e3   : > { %s847_s30 = scalar_lea.hbm %s1924_s7, %s1890_s29  ;;  %p1311_p11 = pneg %p1310_p10 }
 0x2e4   : > { %p1317_p4 = por %p1316_p1, %p1315_p12 }
 0x2e6   : > { %p1318_p5 = pnand %p1317_p4, %p1311_p11 }
 0x2e8   : > { %1321 = shalt.err (!%p1318_p5)
}
 0x2e9   : > { %s1322_s19 = scalar_lea.hbm %s847_s30, 64  ;;  %s1326_s22 = scalar_lea.hbm %s1924_s7, 256 }
 0x2ea   : > { %p1323_p2 = scmp.ne.s32.totalorder %s847_s30, %s1322_s19  ;;  %p1327_p8 = scmp.lt.s32.totalorder %s847_s30, %s1924_s7 }
 0x2eb   : > { %p1328_p9 = scmp.lt.s32.totalorder %s1326_s22, %s1322_s19 }
 0x2ec   : > { %p1324_p6 = pnand %p1323_p2, %p1649_p13 }
 0x2ed   : > { %p1329_p10 = por %p1328_p9, %p1327_p8 }
 0x2ee   : > { %p1325_p7 = pneg %p1324_p6 }
 0x2f0   : > { %p1330_p0 = pnand %p1329_p10, %p1325_p7 }
 0x2f2   : > { %1333 = shalt.err (!%p1330_p0)
}
 0x2f3   : > { %1184 = dma.vmem_to_hbm [thread:$0]  (%p1649_p13), %s850_s27, 64, %s847_s30, %s810_s26  }
 0x2f4   : > { %s1121_s14 = sshll.u32 %s1468_s12, 2  ;;  %s831_s6 = sshll.u32 %s1711_s16, 4  ;;  %s832_s6 = int_to_ptr.vmem [resolvable:$true] %s831_s6 }
 0x2f5   : > { %s827_s10 = sadd.s32 %s1464_s11, %s1121_s14  ;;  %s1926_s8 = sld [smem:[#allocation26_spill]] }
 0x2f6   : > { %s1122_s17 = sshll.u32 %s827_s10, 6  ;;  %s1927_s22 = sshll.u32 %s1753_s13, 6 }
 0x2f7   : > { %s1928_s2 = sld [smem:[#allocation28_spill]]  ;;  %s1929_s4 = sand.u32 1, %s1456_s9  }
 0x2f8   : > { %s805_s5 = scalar_lea.sflag [#allocation3], %s1929_s4  ;;  %s1334_s7 = scalar_lea.vmem %s832_s6, 64 }
 0x2f9   : > { %p1335_p0 = scmp.ne.s32.totalorder %s832_s6, %s1334_s7  ;;  %s1491_s11 = smov [#allocation2]  }
 0x2fa   : > { %s1338_s12 = sshll.u32 %s1491_s11, 4  ;;  %s1339_s12 = int_to_ptr.vmem [resolvable:$false] %s1338_s12 }
 0x2fb   : > { %s829_s21 = scalar_lea.hbm %s1926_s8, %s1122_s17  ;;  %p1336_p11 = pnand %p1335_p0, %p1613_p3 }
 0x2fc   : > { %s1340_s16 = scalar_lea.vmem %s1339_s12, 128  ;;  %p1341_p1 = scmp.lt.s32.totalorder %s832_s6, %s1339_s12 }
 0x2fd   : > { %s1788_s3 = scalar_lea.hbm %s1928_s2, %s1927_s22  ;;  %p1337_p12 = pneg %p1336_p11 }
 0x2fe   : > { %p1342_p4 = scmp.lt.s32.totalorder %s1340_s16, %s1334_s7 }
 0x300   : > { %p1343_p5 = por %p1342_p4, %p1341_p1 }
 0x302   : > { %p1344_p2 = pnand %p1343_p5, %p1337_p12 }
 0x304   : > { %1347 = shalt.err (!%p1344_p2)
}
 0x305   : > { %s1348_s13 = scalar_lea.hbm %s829_s21, 64  ;;  %s1352_s4 = scalar_lea.hbm %s1926_s8, 512 }
 0x306   : > { %p1349_p6 = scmp.ne.s32.totalorder %s829_s21, %s1348_s13  ;;  %p1353_p9 = scmp.lt.s32.totalorder %s829_s21, %s1926_s8 }
 0x307   : > { %p1354_p10 = scmp.lt.s32.totalorder %s1352_s4, %s1348_s13 }
 0x308   : > { %p1350_p7 = pnand %p1349_p6, %p1613_p3 }
 0x309   : > { %p1355_p0 = por %p1354_p10, %p1353_p9 }
 0x30a   : > { %p1351_p8 = pneg %p1350_p7 }
 0x30c   : > { %p1356_p11 = pnand %p1355_p0, %p1351_p8 }
 0x30e   : > { %1359 = shalt.err (!%p1356_p11)
}
 0x30f   : > { %1183 = dma.vmem_to_hbm [thread:$0]  (%p1613_p3), %s832_s6, 64, %s829_s21, %s805_s5  }
 0x310   : > { %s1930_s7 = scalar_lea.vmem [#allocation6], %s1666_s20  ;;  %s1492_s17 = smov [#allocation6]  }
 0x311   : > { %s867_s14 = sshll.u32 %s1930_s7, 4  ;;  %s1364_s29 = sshll.u32 %s1492_s17, 4  ;;  %s868_s14 = int_to_ptr.vmem [resolvable:$true] %s867_s14  ;;  %s1365_s29 = int_to_ptr.vmem [resolvable:$false] %s1364_s29 }
 0x312   : > { %s1360_s10 = scalar_lea.vmem %s868_s14, 64  ;;  %s1366_s19 = scalar_lea.vmem %s1365_s29, 128 }
 0x313   : > { %p1361_p12 = scmp.ne.s32.totalorder %s868_s14, %s1360_s10  ;;  %p1367_p5 = scmp.lt.s32.totalorder %s868_s14, %s1365_s29 }
 0x314   : > { %p1368_p2 = scmp.lt.s32.totalorder %s1366_s19, %s1360_s10 }
 0x315   : > { %p1362_p1 = pnand %p1361_p12, %p1649_p13 }
 0x316   : > { %p1369_p6 = por %p1368_p2, %p1367_p5 }
 0x317   : > { %p1363_p4 = pneg %p1362_p1 }
 0x319   : > { %p1370_p7 = pnand %p1369_p6, %p1363_p4 }
 0x31b   : > { %1373 = shalt.err (!%p1370_p7)
}
 0x31c   : > { %s1374_s5 = scalar_lea.hbm %s1788_s3, 64  ;;  %s1378_s6 = scalar_lea.hbm %s1928_s2, 256 }
 0x31d   : > { %p1375_p3 = scmp.ne.s32.totalorder %s1788_s3, %s1374_s5  ;;  %p1379_p10 = scmp.lt.s32.totalorder %s1788_s3, %s1928_s2 }
 0x31e   : > { %p1380_p0 = scmp.lt.s32.totalorder %s1378_s6, %s1374_s5 }
 0x31f   : > { %p1376_p8 = pnand %p1375_p3, %p1649_p13 }
 0x320   : > { %p1381_p11 = por %p1380_p0, %p1379_p10 }
 0x321   : > { %p1377_p9 = pneg %p1376_p8 }
 0x323   : > { %p1382_p12 = pnand %p1381_p11, %p1377_p9 }
 0x325   : > { %1385 = shalt.err (!%p1382_p12)
}
 0x326   : > { %1185 = dma.vmem_to_hbm [thread:$0]  (%p1649_p13), %s868_s14, 64, %s1788_s3, %s810_s26  }
 0x327 PF: > { %s1931_s11 = sld [smem:[#allocation10_spill]]  ;;  %p1199_p1 = scmp.ge.s32.totalorder %s1480_s15, 2 }
 0x328   : > { %s1932_s12 = sld [smem:[#allocation17_spill]] }
 0x32d   : > { %s879_s16 = sand.u32 1, %s1931_s11  }
 0x32e   : > { %p1933_p4 = scmp.ne.s32.totalorder %s1932_s12, 0  ;;  %s880_s13 = scalar_lea.sflag [#allocation3], %s879_s16 }
 0x330   : > { %p1190_p5 = pnand %p1199_p1, %p1933_p4 }
 0x332   : > { %p1191_p2 = pneg %p1190_p5 }
 0x334   : > { %1431 = dma.done.wait (%p1191_p2), %s880_s13, 64  }
 0x335   : > { %1433 = vsyncadd (%p1191_p2), %s880_s13, 4294967232  ;;  %s1934_s0 = sadd.s32 4294967294, %s1480_s15   ;;  %p1935_p6 = scmp.ne.s32.totalorder %s1915_s25, 0 }
 0x336   : > { %s888_s23 = sand.u32 1, %s1934_s0  }
 0x337   : > { %p1193_p7 = pnand %p1199_p1, %p1935_p6  ;;  %s889_s3 = scalar_lea.sflag [#allocation5], %s888_s23 }
 0x339   : > { %p1194_p3 = pneg %p1193_p7 }
 0x33b   : > { %1435 = dma.done.wait (%p1194_p3), %s889_s3, 128  }
 0x33c   : > { %1437 = vsyncadd (%p1194_p3), %s889_s3, 4294967168  ;;  %s25_s15 = sadd.s32 1, %s1480_s15   ;;  %s1936_s18 = sld [smem:[#allocation9_spill]] }
 0x33d   : > { %p22_p13 = scmp.ge.s32.totalorder %s25_s15, 10   ;;  %s1937_s29 = sld [smem:[#allocation19_spill]] }
 0x33e   : > { %s1938_s26 = sld [smem:[#allocation11_spill]]  ;;  %s1944_s27 = smov %s1444_s28 }
 0x33f   : > { %s1939_s10 = sld [smem:[#allocation18_spill]]  ;;  %s1946_s30 = smov %s1456_s9 }
 0x340   : > { %s1940_s11 = sld [smem:[#allocation12_spill]]  ;;  %24 = sbr.rel (!%p22_p13) target bundleno = 19 (0x13), region = 130 }
 0x341   : > { %s1941_s12 = sld [smem:[#allocation13_spill]] }
 0x342   : > { %s1942_s13 = sld [smem:[#allocation14_spill]]  ;;  %s1945_s28 = smov %s1936_s18 }
 0x343   : > { %s1943_s14 = sld [smem:[#allocation16_spill]] }
 0x344   : > { %s1947_s9 = smov %s1938_s26 }
 0x345   :  { %903 = vsyncpa [#allocation3], 1 }
 0x346   :  { %905 = vsyncpa [#allocation3 + $0x1], 1 }
 0x347   :  { %906 = vsyncpa [#allocation5], 1 }
 0x348   :  { %908 = vsyncpa [#allocation5 + $0x1], 1 }

</bundles_post_ra>
